<compile_context>
chip_gen: v7x
topology: tpu7x:2x2x1
jax: 0.10.0
libtpu: 0.0.40
codegen_flags: <defaults>
</compile_context>

<pallas_src>
import functools

import jax
import jax.numpy as jnp
from jax.experimental import pallas as pl
from jax.experimental.pallas import tpu as pltpu

INPUT = 7      # X_train.shape[1] (N, P, K, temp, humidity, ph, rain)
HIDDEN = 80
OUTPUT = 22    # len(codes)

# Lane-aligned padded sizes (kept at 128-wide; see header note).
IN_P = 8
HID_P = 128
OUT_P = 128

COMPUTE_DTYPE = jnp.bfloat16     # MXU-native operand dtype; accumulation is f32.
OUT_STORE_DTYPE = jnp.bfloat16   # halves the dominant HBM writeback (+ vst pressure on v5e).


def mlp_kernel(x_ref, w1_ref, b1_ref, w2_ref, b2_ref, w3_ref, b3_ref, o_ref):
    # Fused 3-layer MLP on one (TB, IN_P) batch tile; all K/N dims lane-aligned.
    x = x_ref[...]                                                   # (TB, IN_P) bf16
    h1 = jnp.dot(x, w1_ref[...], preferred_element_type=jnp.float32) + b1_ref[...]
    h1 = jnp.maximum(h1, 0.0).astype(COMPUTE_DTYPE)                  # (TB, HID_P)
    h2 = jnp.dot(h1, w2_ref[...], preferred_element_type=jnp.float32) + b2_ref[...]
    h2 = jnp.maximum(h2, 0.0).astype(COMPUTE_DTYPE)                  # (TB, HID_P)
    out = jnp.dot(h2, w3_ref[...], preferred_element_type=jnp.float32) + b3_ref[...]
    o_ref[...] = out.astype(o_ref.dtype)                             # lane-dense bf16 store


def _batch_tiling(batch, tb_max):
    """Pick (tile_rows, padded_batch).

    Goals: tiles as large as possible (up to tb_max, default 512) to amortize
    per-step overhead; an even number of >=2 grid steps whenever there are >=2
    sublane-rows of work so the "parallel" axis shards evenly across v7x's two
    TensorCores; tile row count stays a multiple of 8 sublanes.
    """
    rows = max(pl.cdiv(batch, 8) * 8, 8)           # sublane-aligned row count
    n_steps = max(1, pl.cdiv(rows, tb_max))
    if rows // 8 >= 2:
        n_steps = max(n_steps, 2)                  # give both v7x TCs work
    if n_steps > 1 and n_steps % 2:
        n_steps += 1                               # balanced load across 2 TCs
    tb = pl.cdiv(pl.cdiv(rows, n_steps), 8) * 8
    return tb, tb * n_steps


@functools.partial(jax.jit, static_argnames=("tb_max",))
def mlp_forward(x, w1, b1, w2, b2, w3, b3, *, tb_max=512):
    """x: (B, INPUT) f32; padded bf16/f32 params from pad_params(). Returns (B, OUTPUT) f32."""
    B = x.shape[0]
    tb, b_pad = _batch_tiling(B, tb_max)

    # Zero-pad batch rows + feature columns and cast to bf16 (single fused XLA
    # op; x traffic at 16 B/row is tiny next to the output writeback, so fusing
    # this into the kernel was not worth the extra complexity).
    x_p = jnp.zeros((b_pad, IN_P), COMPUTE_DTYPE)
    x_p = x_p.at[:B, :INPUT].set(x.astype(COMPUTE_DTYPE))

    # Whole-array, VMEM-resident (DMA'd once, reused across every grid step).
    vmem = pl.BlockSpec(memory_space=pltpu.MemorySpace.VMEM)

    out_p = pl.pallas_call(
        mlp_kernel,
        out_shape=jax.ShapeDtypeStruct((b_pad, OUT_P), OUT_STORE_DTYPE),
        grid=(b_pad // tb,),
        in_specs=[
            pl.BlockSpec((tb, IN_P), lambda i: (i, 0)),   # batch-tiled activations
            vmem, vmem,                                    # w1, b1
            vmem, vmem,                                    # w2, b2
            vmem, vmem,                                    # w3, b3
        ],
        # Lane-dense 128-wide bf16 output slab (unmasked vst, half of f32 bytes).
        out_specs=pl.BlockSpec((tb, OUT_P), lambda i: (i, 0)),
        compiler_params=pltpu.CompilerParams(
            dimension_semantics=("parallel",)),            # shard batch grid over v7x's 2 TCs
    )(x_p, w1, b1, w2, b2, w3, b3)

    return out_p[:B, :OUTPUT].astype(jnp.float32)


def init_linear(key, fan_in, fan_out):
    # Mimic torch.nn.Linear default init: U(-1/sqrt(fan_in), 1/sqrt(fan_in))
    kw, kb = jax.random.split(key)
    bound = 1.0 / jnp.sqrt(fan_in)
    w = jax.random.uniform(kw, (fan_in, fan_out), jnp.float32, -bound, bound)
    b = jax.random.uniform(kb, (1, fan_out), jnp.float32, -bound, bound)
    return w, b


def pad_params(params):
    """Zero-pad params to lane-aligned shapes; weights -> bf16, biases stay f32.

    Zero padding is numerically safe: padded x/w1 columns are zero, ReLU(0)=0,
    and padded rows of w2/w3 are zero, so padded lanes contribute nothing.
    """
    w1, b1, w2, b2, w3, b3 = params

    def pad_w(w, rows, cols):
        out = jnp.zeros((rows, cols), COMPUTE_DTYPE)
        return out.at[: w.shape[0], : w.shape[1]].set(w.astype(COMPUTE_DTYPE))

    def pad_b(b, cols):
        out = jnp.zeros((1, cols), jnp.float32)
        return out.at[:, : b.shape[1]].set(b)

    return (pad_w(w1, IN_P, HID_P), pad_b(b1, HID_P),
            pad_w(w2, HID_P, HID_P), pad_b(b2, HID_P),
            pad_w(w3, HID_P, OUT_P), pad_b(b3, OUT_P))


def reference(x, params):
    """Same bf16-operand / f32-accumulate / bf16-store math as the kernel, unpadded."""
    w1, b1, w2, b2, w3, b3 = params
    h = x.astype(COMPUTE_DTYPE)
    h = jnp.maximum(jnp.dot(h, w1.astype(COMPUTE_DTYPE),
                            preferred_element_type=jnp.float32) + b1, 0.0)
    h = h.astype(COMPUTE_DTYPE)
    h = jnp.maximum(jnp.dot(h, w2.astype(COMPUTE_DTYPE),
                            preferred_element_type=jnp.float32) + b2, 0.0)
    h = h.astype(COMPUTE_DTYPE)
    out = jnp.dot(h, w3.astype(COMPUTE_DTYPE),
                  preferred_element_type=jnp.float32) + b3
    return out.astype(OUT_STORE_DTYPE).astype(jnp.float32)


if __name__ == "__main__":
    key = jax.random.PRNGKey(0)
    k_x, k1, k2, k3 = jax.random.split(key, 4)

    params = (*init_linear(k1, INPUT, HIDDEN),
              *init_linear(k2, HIDDEN, HIDDEN),
              *init_linear(k3, HIDDEN, OUTPUT))
    padded = pad_params(params)

    # Small primary check (single-step grid).
    B = 8
    x = jax.random.normal(k_x, (B, INPUT), jnp.float32)
    out = jax.block_until_ready(mlp_forward(x, *padded))
    ref = reference(x, params)
    assert out.shape == (B, OUTPUT)
    assert jnp.allclose(out, ref, atol=1e-2, rtol=1e-2), \
        float(jnp.max(jnp.abs(out - ref)))

    # Second check exercising the multi-step (>=2, even) grid + batch padding path.
    B2 = 24
    x2 = jax.random.normal(k_x, (B2, INPUT), jnp.float32)
    out2 = jax.block_until_ready(mlp_forward(x2, *padded))
    ref2 = reference(x2, params)
    assert out2.shape == (B2, OUTPUT)
    assert jnp.allclose(out2, ref2, atol=1e-2, rtol=1e-2), \
        float(jnp.max(jnp.abs(out2 - ref2)))

    print("KERNEL_OK")
</pallas_src>

<mosaic_0001>
module attributes {stable_mosaic.version = 11 : i64} {
  func.func @mlp_kernel(%arg0: i32, %arg1: memref<8x8xbf16, #tpu.memory_space<vmem>>, %arg2: memref<8x128xbf16, #tpu.memory_space<vmem>>, %arg3: memref<1x128xf32, #tpu.memory_space<vmem>>, %arg4: memref<128x128xbf16, #tpu.memory_space<vmem>>, %arg5: memref<1x128xf32, #tpu.memory_space<vmem>>, %arg6: memref<128x128xbf16, #tpu.memory_space<vmem>>, %arg7: memref<1x128xf32, #tpu.memory_space<vmem>>, %arg8: memref<8x128xbf16, #tpu.memory_space<vmem>>) attributes {dimension_semantics = [#tpu.dimension_semantics<parallel>], iteration_bounds = array<i64: 1>, scalar_prefetch = 0 : i64, scratch_operands = 0 : i64, tpu.core_type = #tpu.core_type<tc>, window_params = [{transform_indices = @transform_0, window_bounds = array<i64: 8, 8>}, {pipeline_mode = #tpu.pipeline_mode<synchronous>, transform_indices = @transform_1, window_bounds = array<i64: 8, 128>}, {pipeline_mode = #tpu.pipeline_mode<synchronous>, transform_indices = @transform_2, window_bounds = array<i64: 1, 128>}, {pipeline_mode = #tpu.pipeline_mode<synchronous>, transform_indices = @transform_3, window_bounds = array<i64: 128, 128>}, {pipeline_mode = #tpu.pipeline_mode<synchronous>, transform_indices = @transform_4, window_bounds = array<i64: 1, 128>}, {pipeline_mode = #tpu.pipeline_mode<synchronous>, transform_indices = @transform_5, window_bounds = array<i64: 128, 128>}, {pipeline_mode = #tpu.pipeline_mode<synchronous>, transform_indices = @transform_6, window_bounds = array<i64: 1, 128>}, {transform_indices = @transform_7, window_bounds = array<i64: 8, 128>}]} {
    %c0 = arith.constant 0 : index
    %c0_0 = arith.constant 0 : index
    %0 = vector.load %arg1[%c0, %c0_0] : memref<8x8xbf16, #tpu.memory_space<vmem>>, vector<8x8xbf16>
    %c0_1 = arith.constant 0 : index
    %c0_2 = arith.constant 0 : index
    %1 = vector.load %arg2[%c0_1, %c0_2] : memref<8x128xbf16, #tpu.memory_space<vmem>>, vector<8x128xbf16>
    %cst = arith.constant dense<0.000000e+00> : vector<8x128xf32>
    %2 = tpu.matmul %0, %1, %cst {dimension_numbers = #tpu.dot_dimension_numbers<[1], [0], [0], [1], [0, 0, 1, 1], [], []>} : vector<8x8xbf16>, vector<8x128xbf16>, vector<8x128xf32> -> vector<8x128xf32>
    %c0_3 = arith.constant 0 : index
    %c0_4 = arith.constant 0 : index
    %3 = vector.load %arg3[%c0_3, %c0_4] : memref<1x128xf32, #tpu.memory_space<vmem>>, vector<1x128xf32>
    %4 = vector.broadcast %3 : vector<1x128xf32> to vector<8x128xf32>
    %5 = arith.addf %2, %4 : vector<8x128xf32>
    %cst_5 = arith.constant 0.000000e+00 : f32
    %6 = vector.broadcast %cst_5 : f32 to vector<8x128xf32>
    %7 = arith.maximumf %5, %6 : vector<8x128xf32>
    %8 = arith.truncf %7 : vector<8x128xf32> to vector<8x128xbf16>
    %c0_6 = arith.constant 0 : index
    %c0_7 = arith.constant 0 : index
    %9 = vector.load %arg4[%c0_6, %c0_7] : memref<128x128xbf16, #tpu.memory_space<vmem>>, vector<128x128xbf16>
    %cst_8 = arith.constant dense<0.000000e+00> : vector<8x128xf32>
    %10 = tpu.matmul %8, %9, %cst_8 {dimension_numbers = #tpu.dot_dimension_numbers<[1], [0], [0], [1], [0, 0, 1, 1], [], []>} : vector<8x128xbf16>, vector<128x128xbf16>, vector<8x128xf32> -> vector<8x128xf32>
    %c0_9 = arith.constant 0 : index
    %c0_10 = arith.constant 0 : index
    %11 = vector.load %arg5[%c0_9, %c0_10] : memref<1x128xf32, #tpu.memory_space<vmem>>, vector<1x128xf32>
    %12 = vector.broadcast %11 : vector<1x128xf32> to vector<8x128xf32>
    %13 = arith.addf %10, %12 : vector<8x128xf32>
    %cst_11 = arith.constant 0.000000e+00 : f32
    %14 = vector.broadcast %cst_11 : f32 to vector<8x128xf32>
    %15 = arith.maximumf %13, %14 : vector<8x128xf32>
    %16 = arith.truncf %15 : vector<8x128xf32> to vector<8x128xbf16>
    %c0_12 = arith.constant 0 : index
    %c0_13 = arith.constant 0 : index
    %17 = vector.load %arg6[%c0_12, %c0_13] : memref<128x128xbf16, #tpu.memory_space<vmem>>, vector<128x128xbf16>
    %cst_14 = arith.constant dense<0.000000e+00> : vector<8x128xf32>
    %18 = tpu.matmul %16, %17, %cst_14 {dimension_numbers = #tpu.dot_dimension_numbers<[1], [0], [0], [1], [0, 0, 1, 1], [], []>} : vector<8x128xbf16>, vector<128x128xbf16>, vector<8x128xf32> -> vector<8x128xf32>
    %c0_15 = arith.constant 0 : index
    %c0_16 = arith.constant 0 : index
    %19 = vector.load %arg7[%c0_15, %c0_16] : memref<1x128xf32, #tpu.memory_space<vmem>>, vector<1x128xf32>
    %20 = vector.broadcast %19 : vector<1x128xf32> to vector<8x128xf32>
    %21 = arith.addf %18, %20 : vector<8x128xf32>
    %22 = arith.truncf %21 : vector<8x128xf32> to vector<8x128xbf16>
    %c0_17 = arith.constant 0 : index
    %c0_18 = arith.constant 0 : index
    %23 = vector.load %arg8[%c0_17, %c0_18] : memref<8x128xbf16, #tpu.memory_space<vmem>>, vector<8x128xbf16>
    tpu.vector_store %arg8[%c0_17, %c0_18], %22 {strides = array<i32>} : memref<8x128xbf16, #tpu.memory_space<vmem>>, vector<8x128xbf16>,
    return
  }
  func.func @transform_0(%arg0: i32) -> (i32, i32) {
    %c0_i32 = arith.constant 0 : i32
    %c0_i32_0 = arith.constant 0 : i32
    return %arg0, %c0_i32 : i32, i32
  }
  func.func @transform_1(%arg0: i32) -> (i32, i32) {
    %c0_i32 = arith.constant 0 : i32
    %c0_i32_0 = arith.constant 0 : i32
    %c0_i32_1 = arith.constant 0 : i32
    return %c0_i32, %c0_i32_0 : i32, i32
  }
  func.func @transform_2(%arg0: i32) -> (i32, i32) {
    %c0_i32 = arith.constant 0 : i32
    %c0_i32_0 = arith.constant 0 : i32
    %c0_i32_1 = arith.constant 0 : i32
    return %c0_i32, %c0_i32_0 : i32, i32
  }
  func.func @transform_3(%arg0: i32) -> (i32, i32) {
    %c0_i32 = arith.constant 0 : i32
    %c0_i32_0 = arith.constant 0 : i32
    %c0_i32_1 = arith.constant 0 : i32
    return %c0_i32, %c0_i32_0 : i32, i32
  }
  func.func @transform_4(%arg0: i32) -> (i32, i32) {
    %c0_i32 = arith.constant 0 : i32
    %c0_i32_0 = arith.constant 0 : i32
    %c0_i32_1 = arith.constant 0 : i32
    return %c0_i32, %c0_i32_0 : i32, i32
  }
  func.func @transform_5(%arg0: i32) -> (i32, i32) {
    %c0_i32 = arith.constant 0 : i32
    %c0_i32_0 = arith.constant 0 : i32
    %c0_i32_1 = arith.constant 0 : i32
    return %c0_i32, %c0_i32_0 : i32, i32
  }
  func.func @transform_6(%arg0: i32) -> (i32, i32) {
    %c0_i32 = arith.constant 0 : i32
    %c0_i32_0 = arith.constant 0 : i32
    %c0_i32_1 = arith.constant 0 : i32
    return %c0_i32, %c0_i32_0 : i32, i32
  }
  func.func @transform_7(%arg0: i32) -> (i32, i32) {
    %c0_i32 = arith.constant 0 : i32
    %c0_i32_0 = arith.constant 0 : i32
    return %arg0, %c0_i32 : i32, i32
  }
}

</mosaic_0001>

<bundles_post_ra>
// kernel: mlp_forward.1
= control target key start
LH: loop header
LB: loop body
LE: loop exit
PB: predicated region body
PF: predicated region fallthrough
CT: control target
= control target key end

     0   :  { %12 = vsyncpa [#allocation3], 0  ;;  %s613_s0 = inlined_call_operand.vmem [shape: bf16[8,8], index: 0, kind: input, shape index: {}]   ;;  %s614_s1 = inlined_call_operand.vmem [shape: bf16[8,128], index: 1, kind: input, shape index: {}]   ;;  %s615_s2 = inlined_call_operand.vmem [shape: f32[1,128], index: 2, kind: input, shape index: {}]   ;;  %s616_s3 = inlined_call_operand.hbm [shape: bf16[128,128], index: 3, kind: input, shape index: {}]   ;;  %s617_s4 = inlined_call_operand.vmem [shape: f32[1,128], index: 4, kind: input, shape index: {}]   ;;  %s618_s5 = inlined_call_operand.hbm [shape: bf16[128,128], index: 5, kind: input, shape index: {}]   ;;  %s619_s6 = inlined_call_operand.vmem [shape: f32[1,128], index: 6, kind: input, shape index: {}]   ;;  %s620_s7 = inlined_call_operand.vmem [shape: bf16[8,128], index: 7, kind: output, shape index: {}]  }
   0x1   :  { %13 = vsyncpa [#allocation5], 0  ;;  %s502_s24 = smov [#allocation2]   ;;  %s454_s28 = scalar_lea.hbm %s616_s3, 1024 }
   0x2   :  { %s25_s25 = sshll.u32 %s502_s24, 4  ;;  %p455_p0 = scmp.ne.s32.totalorder %s616_s3, %s454_s28  ;;  %s26_s25 = int_to_ptr.vmem [resolvable:$true] %s25_s25 }
   0x3   :  { %p458_p1 = scmp.lt.u32.totalorder %s454_s28, %s616_s3 }
   0x5   :  { %p460_p2 = pnand %p458_p1, %p455_p0 }
   0x7   :  { %463 = shalt.err (!%p460_p2)
}
   0x8   :  { %s464_s10 = scalar_lea.vmem %s26_s25, 1024  ;;  %p469_p4 = scmp.lt.s32.totalorder %s26_s25, %s26_s25 }
   0x9   :  { %p465_p3 = scmp.ne.s32.totalorder %s26_s25, %s464_s10  ;;  %p470_p5 = scmp.lt.s32.totalorder %s464_s10, %s464_s10 }
   0xb   :  { %p471_p6 = por %p470_p5, %p469_p4 }
   0xd   :  { %p472_p7 = pnand %p471_p6, %p465_p3 }
   0xf   :  { %475 = shalt.err (!%p472_p7)
}
  0x10   :  { %s503_s11 = smov 64   ;;  %s504_s12 = smov 4  }
  0x11   :  { %31 = dma.hbm_to_vmem [thread:$0]  %s616_s3, 1024, %s26_s25, [#allocation3], %s503_s11, %s503_s11, %s504_s12  }
  0x12   :  { %s505_s15 = smov [#allocation4]   ;;  %s476_s19 = scalar_lea.hbm %s618_s5, 1024 }
  0x13   :  { %s39_s16 = sshll.u32 %s505_s15, 4  ;;  %p477_p8 = scmp.ne.s32.totalorder %s618_s5, %s476_s19  ;;  %s40_s16 = int_to_ptr.vmem [resolvable:$true] %s39_s16 }
  0x14   :  { %p480_p9 = scmp.lt.u32.totalorder %s476_s19, %s618_s5 }
  0x16   :  { %p482_p10 = pnand %p480_p9, %p477_p8 }
  0x18   :  { %485 = shalt.err (!%p482_p10)
}
  0x19   :  { %s486_s24 = scalar_lea.vmem %s40_s16, 1024  ;;  %p491_p12 = scmp.lt.s32.totalorder %s40_s16, %s40_s16 }
  0x1a   :  { %p487_p11 = scmp.ne.s32.totalorder %s40_s16, %s486_s24  ;;  %p492_p13 = scmp.lt.s32.totalorder %s486_s24, %s486_s24 }
  0x1c   :  { %p493_p0 = por %p492_p13, %p491_p12 }
  0x1e   :  { %p494_p1 = pnand %p493_p0, %p487_p11 }
  0x20   :  { %497 = shalt.err (!%p494_p1)
}
  0x21   :  { %45 = dma.hbm_to_vmem [thread:$0]  %s618_s5, 1024, %s40_s16, [#allocation5], %s503_s11, %s503_s11, %s504_s12  }
  0x22   :  { %498 = dma.done.wait [#allocation3], 1024  }
  0x23   :  { %499 = vsyncadd [#allocation3], 4294966272 }
  0x24   :  { %500 = dma.done.wait [#allocation5], 1024  }
  0x25   :  { %501 = vsyncadd [#allocation5], 4294966272  ;;  %v506_v0 = vmov 0.0   ;;  %vm507_vm0 = vmmov 0   ;;  %vm68_vm1 = vcmask 1043456   ;;  %vm64_vm2 = vcmask 64512  }
  0x26   :  { %386 = vmatprep.subr.bf16.mxu0 %v506_v0  ;;  %388 = vmatprep.mubr.msk.bf16.mxu0 %vm507_vm0, %v506_v0  ;;  %v56_v1 = vld [vmem:[%s614_s1] sm:$0xf]  ;;  %v439_v5 = vld [vmem:[#allocation2 + $0x8] sm:$0xff]   ;;  %v440_v6 = vld [vmem:[#allocation2 + $0x10] sm:$0xff]  }
  0x27   :  { %392 = vmatprep.subr.bf16.mxu1 %v506_v0  ;;  %408 = vmatprep.mubr.msk.bf16.mxu1 %vm507_vm0, %v506_v0  ;;  %v70_v2 = vsel %vm68_vm1, %v56_v1, 0  ;;  %v438_v3 = vld [vmem:[#allocation2] sm:$0xff]   ;;  %v441_v7 = vld [vmem:[#allocation2 + $0x18] sm:$0xff]   ;;  %v443_v9 = vld [vmem:[#allocation2 + $0x28] sm:$0xff]  }
  0x28   :  { %387 = vmatpush3.bf16.msra.mxu0 %v70_v2  ;;  %v55_v4 = vld [vmem:[%s613_s0] sm:$0xf]  ;;  %393 = vmatpush3.bf16.msra.mxu1 %v438_v3  ;;  %v444_v10 = vld [vmem:[#allocation2 + $0x30] sm:$0xff]   ;;  %v445_v11 = vld [vmem:[#allocation2 + $0x38] sm:$0xff]  }
  0x29   :  { %412 = vmatprep.subr.bf16.mxu0 %v506_v0  ;;  %394 = vmatprep.subr.bf16.mxu1 %v506_v0  ;;  %v442_v8 = vld [vmem:[#allocation2 + $0x20] sm:$0xff]   ;;  %v447_v13 = vld [vmem:[#allocation4 + $0x8] sm:$0xff]   ;;  %v448_v14 = vld [vmem:[#allocation4 + $0x10] sm:$0xff]  }
  0x2a   :  { %v446_v12 = vld [vmem:[#allocation4] sm:$0xff]   ;;  %v449_v15 = vld [vmem:[#allocation4 + $0x18] sm:$0xff]   ;;  %v451_v17 = vld [vmem:[#allocation4 + $0x28] sm:$0xff]  }
  0x2b   :  { %389 = vmatmul.mubr.msk.bf16.vlgmr.msra.gmra.mrb[0].mxu0 %vm64_vm2, %v55_v4  ;;  %v450_v16 = vld [vmem:[#allocation4 + $0x20] sm:$0xff]   ;;  %v452_v26 = vld [vmem:[#allocation4 + $0x30] sm:$0xff]   ;;  %v453_v27 = vld [vmem:[#allocation4 + $0x38] sm:$0xff]  }
  0x2c   :  { %428 = vmatprep.mubr.msk.bf16.mxu0 %vm507_vm0, %v506_v0  ;;  %395 = vmatpush3.bf16.msra.mxu1 %v439_v5  ;;  %v346_v18 = vld [vmem:[%s615_s2] ss:$0 sm:$0xff] }
  0x2d   :  { %396 = vmatprep.subr.bf16.mxu1 %v506_v0  ;;  %413 = vmatpush3.bf16.msra.mxu0 %v446_v12  ;;  %v348_v28 = vld [vmem:[%s617_s4] ss:$0 sm:$0xff] }
  0x2e   :  { %414 = vmatprep.subr.bf16.mxu0 %v506_v0  ;;  %v357_v36 = vld [vmem:[%s619_s6] ss:$0 sm:$0xff] }
  0x30   :  { %397 = vmatpush3.bf16.msra.mxu1 %v440_v6 }
  0x31   :  { %398 = vmatprep.subr.bf16.mxu1 %v506_v0  ;;  %415 = vmatpush3.bf16.msra.mxu0 %v447_v13 }
  0x32   :  { %416 = vmatprep.subr.bf16.mxu0 %v506_v0 }
  0x34   :  { %399 = vmatpush3.bf16.msra.mxu1 %v441_v7 }
  0x35   :  { %400 = vmatprep.subr.bf16.mxu1 %v506_v0  ;;  %417 = vmatpush3.bf16.msra.mxu0 %v448_v14 }
  0x36   :  { %418 = vmatprep.subr.bf16.mxu0 %v506_v0 }
  0x38   :  { %401 = vmatpush3.bf16.msra.mxu1 %v442_v8 }
  0x39   :  { %402 = vmatprep.subr.bf16.mxu1 %v506_v0  ;;  %419 = vmatpush3.bf16.msra.mxu0 %v449_v15 }
  0x3a   :  { %420 = vmatprep.subr.bf16.mxu0 %v506_v0 }
  0x3c   :  { %403 = vmatpush3.bf16.msra.mxu1 %v443_v9 }
  0x3d   :  { %404 = vmatprep.subr.bf16.mxu1 %v506_v0  ;;  %421 = vmatpush3.bf16.msra.mxu0 %v450_v16 }
  0x3e   :  { %422 = vmatprep.subr.bf16.mxu0 %v506_v0 }
  0x40   :  { %405 = vmatpush3.bf16.msra.mxu1 %v444_v10 }
  0x41   :  { %406 = vmatprep.subr.bf16.mxu1 %v506_v0  ;;  %423 = vmatpush3.bf16.msra.mxu0 %v451_v17 }
  0x42   :  { %424 = vmatprep.subr.bf16.mxu0 %v506_v0 }
  0x44   :  { %407 = vmatpush3.bf16.msra.mxu1 %v445_v11 }
  0x45   :  { %425 = vmatpush3.bf16.msra.mxu0 %v452_v26 }
  0x46   :  { %426 = vmatprep.subr.bf16.mxu0 %v506_v0 }
  0x49   :  { %427 = vmatpush3.bf16.msra.mxu0 %v453_v27 }
  0xfe   :  { %v106_v19 = vpop.f32.mrb[0].mxu0 }
  0xff   :  { %v107_v20 = vadd.f32 %v346_v18, %v106_v19  ;;  %v390_v21 = vpop.f32.mrb[1].mxu0 }
 0x100   :  { %v109_v22 = vpop.f32.mrb[2].mxu0 }
 0x101   :  { %v112_v23 = vmax.f32 %v107_v20, 0.0  ;;  %v391_v24 = vpop.f32.mrb[3].mxu0 }
 0x103   :  { %v113_v25 = vpack.c.bf16 %v112_v23, %v112_v23 }
 0x105   :  { %409 = vmatmul.mubr.bf16.vlgmr.msra.gmra.mrb[0].mxu1 %v113_v25 }
 0x1d8   :  { %v219_v29 = vpop.f32.mrb[0].mxu1 }
 0x1d9   :  { %v220_v30 = vadd.f32 %v348_v28, %v219_v29  ;;  %v410_v31 = vpop.f32.mrb[1].mxu1 }
 0x1da   :  { %v222_v32 = vpop.f32.mrb[2].mxu1 }
 0x1db   :  { %v225_v33 = vmax.f32 %v220_v30, 0.0  ;;  %v411_v34 = vpop.f32.mrb[3].mxu1 }
 0x1dd   :  { %v226_v35 = vpack.c.bf16 %v225_v33, %v225_v33 }
 0x1df   :  { %429 = vmatmul.mubr.bf16.vlgmr.msra.gmra.mrb[4].mxu0 %v226_v35 }
 0x2b2   :  { %v332_v37 = vpop.f32.mrb[4].mxu0 }
 0x2b3   :  { %v333_v38 = vadd.f32 %v357_v36, %v332_v37  ;;  %v430_v39 = vpop.f32.mrb[5].mxu0 }
 0x2b4   :  { %v335_v40 = vpop.f32.mrb[6].mxu0 }
 0x2b5   :  { %v338_v41 = vpack.c.bf16 %v333_v38, %v333_v38  ;;  %v431_v42 = vpop.f32.mrb[7].mxu0 }
 0x2b7   :  { %339 = vst [vmem:[%s620_s7] sm:$0xf] %v338_v41 }
 0x2b8   :  { %344 = vsyncpa [#allocation3], 1 }
 0x2b9   :  { %345 = vsyncpa [#allocation5], 1 }

</bundles_post_ra>
